<compile_context>
chip_gen: v6e
topology: v6e:2x2x1
jax: 0.10.0
libtpu: 0.0.40
codegen_flags: <defaults>
</compile_context>

<pallas_src>
import functools

import jax
import jax.numpy as jnp
from jax.experimental import pallas as pl
from jax.experimental.pallas import tpu as pltpu

_LANE = 128


def _round_up(x, m):
    return (x + m - 1) // m * m


def _hash_u32(x):
    # lowbias32-style 32-bit integer hash; pure bitwise/mul ops so it lowers both on
    # Mosaic (VPU) and in interpret mode.
    x = x ^ (x >> 16)
    x = x * jnp.uint32(0x7FEB352D)
    x = x ^ (x >> 15)
    x = x * jnp.uint32(0x846CA68B)
    x = x ^ (x >> 16)
    return x


# ----------------------------------------------------------------------------------
# Fused Pallas kernel: logits_pad = dropout(tanh(x @ Wp + bp), p) @ Wc_pad + bc_pad
# ----------------------------------------------------------------------------------
def _fused_head_kernel(seed_ref, x_ref, pw_ref, pb_ref, cw_ref, cb_ref, o_ref,
                       *, drop_p, training, tile_rows, hidden):
    # Pooler dense: [TB, H] @ [H, H] + [1, H]  (bf16 MXU operands, f32 accumulate)
    x = x_ref[...]
    h = jnp.dot(x.astype(jnp.bfloat16), pw_ref[...].astype(jnp.bfloat16),
                preferred_element_type=jnp.float32) + pb_ref[...]
    h = jnp.tanh(h)                                   # EUP slot, free under MXU work

    if training and drop_p > 0.0:
        # Inverted dropout; mask from a counter-based hash PRNG (deterministic in the
        # seed and the *global* element index, so it is tiling-invariant).
        # TODO(synk): on real TPU this could use pltpu.prng_seed/prng_random_bits,
        # but those have no interpret/CPU lowering, so a portable hash is used.
        seed_u = seed_ref[0].astype(jnp.uint32)
        row = jax.lax.broadcasted_iota(jnp.int32, h.shape, 0)
        col = jax.lax.broadcasted_iota(jnp.int32, h.shape, 1)
        g_row = row + pl.program_id(0) * tile_rows
        idx = (g_row * hidden + col).astype(jnp.uint32)
        bits = _hash_u32(_hash_u32(idx) + seed_u)
        keep_thresh = jnp.uint32(min(int((1.0 - drop_p) * 4294967296.0), 4294967295))
        keep = bits < keep_thresh                     # P(keep) = 1 - drop_p
        h = jnp.where(keep, h * (1.0 / (1.0 - drop_p)), 0.0)   # f32 VPU math

    # Classifier Linear into the lane-dense padded slab: [TB, H] @ [H, Cp] + [1, Cp]
    o_ref[...] = jnp.dot(h.astype(jnp.bfloat16), cw_ref[...].astype(jnp.bfloat16),
                         preferred_element_type=jnp.float32) + cb_ref[...]


def bert_head_forward(pooled, pooler_w, pooler_b, cls_w, cls_b, seed, *,
                      drop_p=0.1, training=False):
    """pooled: [B, H] f32; pooler_w: [H, H]; cls_w: [H, C]; returns logits [B, C]."""
    B, H = pooled.shape
    C = cls_w.shape[1]
    Cp = _round_up(max(C, 1), _LANE)                  # lane-dense output width

    # Zero-pad classifier weight/bias to the padded class width (done once per call).
    cw_pad = jnp.zeros((H, Cp), jnp.float32).at[:, :C].set(cls_w.astype(jnp.float32))
    cb_pad = jnp.zeros((1, Cp), jnp.float32).at[0, :C].set(cls_b.astype(jnp.float32))
    pb2d = pooler_b.reshape(1, H).astype(jnp.float32)
    seed_arr = jnp.asarray([seed], dtype=jnp.int32)

    # Batch tile: full batch if small, 512 rows otherwise (fits comfortably inside the
    # 32 MiB default scoped VMEM even on v7x with H=768 and resident weights).
    TB = B if B <= 512 else 512
    grid = (pl.cdiv(B, TB),)

    kernel = functools.partial(_fused_head_kernel, drop_p=float(drop_p),
                               training=bool(training), tile_rows=TB, hidden=H)

    logits_pad = pl.pallas_call(
        kernel,
        out_shape=jax.ShapeDtypeStruct((B, Cp), jnp.float32),
        grid_spec=pltpu.PrefetchScalarGridSpec(
            num_scalar_prefetch=1,                    # seed -> SMEM, positional arg
            grid=grid,
            in_specs=[
                pl.BlockSpec((TB, H), lambda i, seed: (i, 0)),   # pooled, tiled over B
                pl.BlockSpec((H, H), lambda i, seed: (0, 0)),    # pooler W (resident)
                pl.BlockSpec((1, H), lambda i, seed: (0, 0)),    # pooler b (resident)
                pl.BlockSpec((H, Cp), lambda i, seed: (0, 0)),   # classifier W (padded)
                pl.BlockSpec((1, Cp), lambda i, seed: (0, 0)),   # classifier b (padded)
            ],
            out_specs=pl.BlockSpec((TB, Cp), lambda i, seed: (i, 0)),
        ),
        compiler_params=pltpu.CompilerParams(
            dimension_semantics=("parallel",),        # megacore shards the batch grid
        ),
    )(seed_arr, pooled, pooler_w.astype(jnp.float32), pb2d, cw_pad, cb_pad)

    return logits_pad[:, :C]


# ----------------------------------------------------------------------------------
# Glue: tiny deterministic synthetic BERT backbone stand-in.
# TODO(synk): the real `bert_pretrained_model` is an external pretrained module; its
# transformer encoder is replaced by an embedding lookup + masked mean pool here; the
# pooler dense+tanh (which produces outputs[1]) is fused into the Pallas kernel above.
# ----------------------------------------------------------------------------------
def synthetic_bert_mean_pool(params, input_ids, attention_mask):
    emb = params["embedding"][input_ids]                       # [B, S, H]
    mask = attention_mask[..., None].astype(jnp.float32)       # [B, S, 1]
    return (emb * mask).sum(axis=1) / jnp.maximum(mask.sum(axis=1), 1.0)  # [B, H]


def init_params(key, vocab_size, hidden, num_classes):
    k0, k1, k2, k3, k4 = jax.random.split(key, 5)
    scale = 0.02
    return {
        "embedding": scale * jax.random.normal(k0, (vocab_size, hidden), jnp.float32),
        "pooler_w": scale * jax.random.normal(k1, (hidden, hidden), jnp.float32),
        "pooler_b": scale * jax.random.normal(k2, (hidden,), jnp.float32),
        # nn.Linear(bert_output_size, num_classes): torch weight is [C, H]; stored
        # transposed as [H, C] so the kernel computes x @ W + b.
        "cls_w": scale * jax.random.normal(k3, (hidden, num_classes), jnp.float32),
        "cls_b": scale * jax.random.normal(k4, (num_classes,), jnp.float32),
    }


def bert_classifier_forward(params, input_ids, attention_mask, *,
                            drop_p=0.1, training=False, seed=0):
    pooled = synthetic_bert_mean_pool(params, input_ids, attention_mask)  # [B, H]
    return bert_head_forward(pooled, params["pooler_w"], params["pooler_b"],
                             params["cls_w"], params["cls_b"], seed,
                             drop_p=drop_p, training=training)


if __name__ == "__main__":
    # Small shapes consistent with the forward: batch=2, seq=8, hidden=32, classes=4.
    B, S, H, C, VOCAB = 2, 8, 32, 4, 64
    key = jax.random.PRNGKey(0)
    kp, ki = jax.random.split(key)

    params = init_params(kp, VOCAB, H, C)
    input_ids = jax.random.randint(ki, (B, S), 0, VOCAB, dtype=jnp.int32)
    attention_mask = jnp.ones((B, S), dtype=jnp.int32)

    # Eval-mode forward (dropout = identity): check against a pure-JAX reference that
    # mirrors the kernel's bf16-operand / f32-accumulate matmuls.
    logits = bert_classifier_forward(params, input_ids, attention_mask,
                                     drop_p=0.1, training=False)
    logits = jax.block_until_ready(logits)
    assert logits.shape == (B, C)

    pooled = synthetic_bert_mean_pool(params, input_ids, attention_mask)
    ref_h = jnp.tanh(
        jnp.dot(pooled.astype(jnp.bfloat16), params["pooler_w"].astype(jnp.bfloat16),
                preferred_element_type=jnp.float32) + params["pooler_b"])
    ref = jnp.dot(ref_h.astype(jnp.bfloat16), params["cls_w"].astype(jnp.bfloat16),
                  preferred_element_type=jnp.float32) + params["cls_b"]
    assert jnp.allclose(logits, ref, atol=1e-3, rtol=1e-2), "mismatch vs reference"

    # Training-mode forward (exercises the in-kernel dropout path).
    logits_train = bert_classifier_forward(params, input_ids, attention_mask,
                                           drop_p=0.1, training=True, seed=123)
    logits_train = jax.block_until_ready(logits_train)
    assert logits_train.shape == (B, C)
    assert bool(jnp.all(jnp.isfinite(logits_train)))

    # prediction() equivalent: argmax over classes.
    _ = jnp.argmax(logits, axis=1)

    print("KERNEL_OK")
</pallas_src>

<mosaic_0001>
module attributes {stable_mosaic.version = 11 : i64} {
  func.func @_fused_head_kernel(%arg0: i32, %arg1: memref<1xi32, #tpu.memory_space<smem>>, %arg2: memref<2x32xf32, #tpu.memory_space<vmem>>, %arg3: memref<32x32xf32, #tpu.memory_space<vmem>>, %arg4: memref<1x32xf32, #tpu.memory_space<vmem>>, %arg5: memref<32x128xf32, #tpu.memory_space<vmem>>, %arg6: memref<1x128xf32, #tpu.memory_space<vmem>>, %arg7: memref<2x128xf32, #tpu.memory_space<vmem>>) attributes {dimension_semantics = [#tpu.dimension_semantics<parallel>], iteration_bounds = array<i64: 1>, scalar_prefetch = 1 : i64, scratch_operands = 0 : i64, tpu.core_type = #tpu.core_type<tc>, window_params = [{transform_indices = @transform_0, window_bounds = array<i64: 2, 32>}, {pipeline_mode = #tpu.pipeline_mode<synchronous>, transform_indices = @transform_1, window_bounds = array<i64: 32, 32>}, {pipeline_mode = #tpu.pipeline_mode<synchronous>, transform_indices = @transform_2, window_bounds = array<i64: 1, 32>}, {pipeline_mode = #tpu.pipeline_mode<synchronous>, transform_indices = @transform_3, window_bounds = array<i64: 32, 128>}, {pipeline_mode = #tpu.pipeline_mode<synchronous>, transform_indices = @transform_4, window_bounds = array<i64: 1, 128>}, {transform_indices = @transform_5, window_bounds = array<i64: 2, 128>}]} {
    %c0 = arith.constant 0 : index
    %c0_0 = arith.constant 0 : index
    %0 = vector.load %arg2[%c0, %c0_0] : memref<2x32xf32, #tpu.memory_space<vmem>>, vector<2x32xf32>
    %1 = arith.truncf %0 : vector<2x32xf32> to vector<2x32xbf16>
    %c0_1 = arith.constant 0 : index
    %c0_2 = arith.constant 0 : index
    %2 = vector.load %arg3[%c0_1, %c0_2] : memref<32x32xf32, #tpu.memory_space<vmem>>, vector<32x32xf32>
    %3 = arith.truncf %2 : vector<32x32xf32> to vector<32x32xbf16>
    %cst = arith.constant dense<0.000000e+00> : vector<2x32xf32>
    %4 = tpu.matmul %1, %3, %cst {dimension_numbers = #tpu.dot_dimension_numbers<[1], [0], [0], [1], [0, 0, 1, 1], [], []>} : vector<2x32xbf16>, vector<32x32xbf16>, vector<2x32xf32> -> vector<2x32xf32>
    %c0_3 = arith.constant 0 : index
    %c0_4 = arith.constant 0 : index
    %5 = vector.load %arg4[%c0_3, %c0_4] : memref<1x32xf32, #tpu.memory_space<vmem>>, vector<1x32xf32>
    %6 = vector.broadcast %5 : vector<1x32xf32> to vector<2x32xf32>
    %7 = arith.addf %4, %6 : vector<2x32xf32>
    %8 = math.tanh %7 : vector<2x32xf32>
    %9 = arith.truncf %8 : vector<2x32xf32> to vector<2x32xbf16>
    %c0_5 = arith.constant 0 : index
    %c0_6 = arith.constant 0 : index
    %10 = vector.load %arg5[%c0_5, %c0_6] : memref<32x128xf32, #tpu.memory_space<vmem>>, vector<32x128xf32>
    %11 = arith.truncf %10 : vector<32x128xf32> to vector<32x128xbf16>
    %cst_7 = arith.constant dense<0.000000e+00> : vector<2x128xf32>
    %12 = tpu.matmul %9, %11, %cst_7 {dimension_numbers = #tpu.dot_dimension_numbers<[1], [0], [0], [1], [0, 0, 1, 1], [], []>} : vector<2x32xbf16>, vector<32x128xbf16>, vector<2x128xf32> -> vector<2x128xf32>
    %c0_8 = arith.constant 0 : index
    %c0_9 = arith.constant 0 : index
    %13 = vector.load %arg6[%c0_8, %c0_9] : memref<1x128xf32, #tpu.memory_space<vmem>>, vector<1x128xf32>
    %14 = vector.broadcast %13 : vector<1x128xf32> to vector<2x128xf32>
    %15 = arith.addf %12, %14 : vector<2x128xf32>
    %c0_10 = arith.constant 0 : index
    %c0_11 = arith.constant 0 : index
    %16 = vector.load %arg7[%c0_10, %c0_11] : memref<2x128xf32, #tpu.memory_space<vmem>>, vector<2x128xf32>
    tpu.vector_store %arg7[%c0_10, %c0_11], %15 {strides = array<i32>} : memref<2x128xf32, #tpu.memory_space<vmem>>, vector<2x128xf32>,
    return
  }
  func.func @transform_0(%arg0: i32, %arg1: memref<1xi32, #tpu.memory_space<smem>>) -> (i32, i32) {
    %c0_i32 = arith.constant 0 : i32
    %c0_i32_0 = arith.constant 0 : i32
    return %arg0, %c0_i32 : i32, i32
  }
  func.func @transform_1(%arg0: i32, %arg1: memref<1xi32, #tpu.memory_space<smem>>) -> (i32, i32) {
    %c0_i32 = arith.constant 0 : i32
    %c0_i32_0 = arith.constant 0 : i32
    %c0_i32_1 = arith.constant 0 : i32
    return %c0_i32, %c0_i32_0 : i32, i32
  }
  func.func @transform_2(%arg0: i32, %arg1: memref<1xi32, #tpu.memory_space<smem>>) -> (i32, i32) {
    %c0_i32 = arith.constant 0 : i32
    %c0_i32_0 = arith.constant 0 : i32
    %c0_i32_1 = arith.constant 0 : i32
    return %c0_i32, %c0_i32_0 : i32, i32
  }
  func.func @transform_3(%arg0: i32, %arg1: memref<1xi32, #tpu.memory_space<smem>>) -> (i32, i32) {
    %c0_i32 = arith.constant 0 : i32
    %c0_i32_0 = arith.constant 0 : i32
    %c0_i32_1 = arith.constant 0 : i32
    return %c0_i32, %c0_i32_0 : i32, i32
  }
  func.func @transform_4(%arg0: i32, %arg1: memref<1xi32, #tpu.memory_space<smem>>) -> (i32, i32) {
    %c0_i32 = arith.constant 0 : i32
    %c0_i32_0 = arith.constant 0 : i32
    %c0_i32_1 = arith.constant 0 : i32
    return %c0_i32, %c0_i32_0 : i32, i32
  }
  func.func @transform_5(%arg0: i32, %arg1: memref<1xi32, #tpu.memory_space<smem>>) -> (i32, i32) {
    %c0_i32 = arith.constant 0 : i32
    %c0_i32_0 = arith.constant 0 : i32
    return %arg0, %c0_i32 : i32, i32
  }
}

</mosaic_0001>

<bundles_post_ra>
// kernel: tpu_custom_call.1
= control target key start
LH: loop header
LB: loop body
LE: loop exit
PB: predicated region body
PF: predicated region fallthrough
CT: control target
= control target key end

     0   :  { %12 = vsyncpa [#allocation5], 0  ;;  %s349_s0 = inlined_call_operand.<no memory space> [shape: s32[1], index: 0, kind: input, shape index: {}]   ;;  %s350_s1 = inlined_call_operand.vmem [shape: f32[2,32], index: 1, kind: input, shape index: {}]   ;;  %s351_s2 = inlined_call_operand.hbm [shape: f32[32,32], index: 2, kind: input, shape index: {}]   ;;  %s352_s3 = inlined_call_operand.vmem [shape: f32[1,32], index: 3, kind: input, shape index: {}]   ;;  %s353_s4 = inlined_call_operand.hbm [shape: f32[32,128], index: 4, kind: input, shape index: {}]   ;;  %s354_s5 = inlined_call_operand.vmem [shape: f32[1,128], index: 5, kind: input, shape index: {}]   ;;  %s355_s6 = inlined_call_operand.hbm [shape: f32[2,128], index: 6, kind: output, shape index: {}]  }
   0x1   :  { %13 = vsyncpa [#allocation8], 0 }
   0x2   :  { %14 = vsyncpa [#allocation6], 0  ;;  %s287_s0 = smov [#allocation4]  }
   0x3   :  { %s22_s21 = sshll.u32 %s287_s0, 4  ;;  %s23_s21 = int_to_ptr.vmem [resolvable:$true] %s22_s21 }
   0x4   :  { %s229_s22 = scalar_lea.vmem %s23_s21, 512  ;;  %p234_p1 = scmp.lt.s32.totalorder %s23_s21, %s23_s21 }
   0x5   :  { %p230_p0 = scmp.ne.s32.totalorder %s23_s21, %s229_s22  ;;  %p235_p2 = scmp.lt.s32.totalorder %s229_s22, %s229_s22 }
   0x7   :  { %p236_p3 = por %p235_p2, %p234_p1 }
   0x9   :  { %p237_p4 = pnand %p236_p3, %p230_p0 }
   0xb   :  { %240 = shalt.err (!%p237_p4)
}
   0xc   :  { %s288_s23 = smov 128   ;;  %s289_s24 = smov 8  }
   0xd   :  { %28 = dma.hbm_to_vmem [thread:$0]  %s351_s2, 512, %s23_s21, [#allocation5], %s288_s23, %s288_s23, %s289_s24  }
   0xe   :  { %s290_s27 = smov [#allocation7]  }
   0xf   :  { %s36_s28 = sshll.u32 %s290_s27, 4  ;;  %s37_s28 = int_to_ptr.vmem [resolvable:$true] %s36_s28 }
  0x10   :  { %s249_s29 = scalar_lea.vmem %s37_s28, 512  ;;  %p254_p6 = scmp.lt.s32.totalorder %s37_s28, %s37_s28 }
  0x11   :  { %p250_p5 = scmp.ne.s32.totalorder %s37_s28, %s249_s29  ;;  %p255_p7 = scmp.lt.s32.totalorder %s249_s29, %s249_s29 }
  0x13   :  { %p256_p8 = por %p255_p7, %p254_p6 }
  0x15   :  { %p257_p9 = pnand %p256_p8, %p250_p5 }
  0x17   :  { %260 = shalt.err (!%p257_p9)
}
  0x18   :  { %42 = dma.hbm_to_vmem [thread:$0]  %s353_s4, 512, %s37_s28, [#allocation8], %s288_s23, %s288_s23, %s289_s24  }
  0x19   :  { %281 = dma.done.wait [#allocation5], 512  }
  0x1a   :  { %282 = vsyncadd [#allocation5], 4294966784 }
  0x1b   :  { %283 = dma.done.wait [#allocation8], 512  }
  0x1c   :  { %284 = vsyncadd [#allocation8], 4294966784  ;;  %v291_v0 = vmov 0.0   ;;  %vm292_vm0 = vmmov 0   ;;  %v56_v1 = vld [vmem:[#allocation4 + $0x10] sm:$0xff]  ;;  %v57_v2 = vld [vmem:[#allocation4 + $0x18] sm:$0xff] }
  0x1d   :  { %196 = vmatprep.subr.bf16.mxu0 %v291_v0  ;;  %200 = vmatprep.mubr.msk.bf16.mxu0 %vm292_vm0, %v291_v0  ;;  %v54_v3 = vld [vmem:[#allocation4] sm:$0xff]  ;;  %v59_v4 = vpack.c.bf16 %v57_v2, %v56_v1  ;;  %v55_v5 = vld [vmem:[#allocation4 + $0x8] sm:$0xff]  ;;  %vm67_vm1 = vcmask 261120   ;;  %v115_v9 = vld [vmem:[#allocation7 + $0x10] sm:$0xff]  ;;  %s293_s11 = smov [#allocation9]  }
  0x1e   :  { %204 = vmatprep.subr.bf16.mxu1 %v291_v0  ;;  %208 = vmatprep.mubr.msk.bf16.mxu1 %vm292_vm0, %v291_v0  ;;  %v58_v6 = vpack.c.bf16 %v55_v5, %v54_v3  ;;  %v52_v7 = vld [vmem:[%s350_s1] sm:$0x3]  ;;  %v116_v10 = vld [vmem:[#allocation7 + $0x18] sm:$0xff]  ;;  %v114_v13 = vld [vmem:[#allocation7 + $0x8] sm:$0xff]  ;;  %s176_s12 = sshll.u32 %s293_s11, 4  ;;  %s177_s12 = int_to_ptr.vmem [resolvable:$true] %s176_s12 }
  0x1f   :  { %197 = vmatpush3.bf16.msra.mxu0 %v59_v4  ;;  %v53_v8 = vpack.c.bf16 %v52_v7, %v52_v7  ;;  %v118_v11 = vpack.c.bf16 %v116_v10, %v115_v9  ;;  %v113_v12 = vld [vmem:[#allocation7] sm:$0xff]  ;;  %p266_p11 = scmp.lt.s32.totalorder %s177_s12, %s177_s12 }
  0x20   :  { %198 = vmatprep.subr.bf16.mxu0 %v291_v0  ;;  %v117_v14 = vpack.c.bf16 %v114_v13, %v113_v12  ;;  %v186_v15 = vld [vmem:[%s352_s3] ss:$0 sm:$0xff]  ;;  %s261_s3 = scalar_lea.vmem %s177_s12, 32 }
  0x21   :  { %205 = vmatpush3.bf16.msra.mxu1 %v118_v11  ;;  %v188_v23 = vld [vmem:[%s354_s5] ss:$0 sm:$0xff]  ;;  %p262_p10 = scmp.ne.s32.totalorder %s177_s12, %s261_s3  ;;  %p267_p12 = scmp.lt.s32.totalorder %s261_s3, %s261_s3 }
  0x22   :  { %206 = vmatprep.subr.bf16.mxu1 %v291_v0 }
  0x23   :  { %199 = vmatpush3.bf16.msra.mxu0 %v58_v6  ;;  %p268_p13 = por %p267_p12, %p266_p11 }
  0x25   :  { %207 = vmatpush3.bf16.msra.mxu1 %v117_v14  ;;  %p269_p0 = pnand %p268_p13, %p262_p10 }
  0x26   :  { %201 = vmatmul.mubr.msk.bf16.vlgmr.msra.gmra.mxu0 %vm67_vm1, %v53_v8 }
  0xe6   :  { %v105_v16 = vpop.f32.mrf.mxu0 }
  0xe7   :  { %v106_v17 = vadd.f32 %v186_v15, %v105_v16 }
  0xe8   :  { %v202_v18 = vpop.f32.mrf.mxu0 }
  0xe9   :  { %219 = vtanh.f32 %v106_v17 }
  0xea   :  { %v108_v19 = vpop.f32.mrf.mxu0 }
  0xec   :  { %v203_v20 = vpop.f32.mrf.mxu0 }
  0xf6   :  { %v220_v21 = vpop.eup %219 }
  0xf7   :  { %v112_v22 = vpack.c.bf16 %v220_v21, %v220_v21 }
  0xf9   :  { %209 = vmatmul.mubr.msk.bf16.vlgmr.msra.gmra.mxu1 %vm67_vm1, %v112_v22 }
 0x1b9   :  { %v163_v24 = vpop.f32.mrf.mxu1 }
 0x1ba   :  { %v164_v25 = vadd.f32 %v188_v23, %v163_v24 }
 0x1bb   :  { %v210_v26 = vpop.f32.mrf.mxu1 }
 0x1bc   :  { %169 = vst [vmem:[#allocation9] sm:$0x3] %v164_v25 }
 0x1bd   :  { %v166_v27 = vpop.f32.mrf.mxu1 }
 0x1be   :  { %272 = shalt.err (!%p269_p0)
}
 0x1bf   :  { %179 = dma.vmem_to_hbm [thread:$0]  %s177_s12, 32, %s355_s6, [#allocation6]   ;;  %v211_v28 = vpop.f32.mrf.mxu1 }
 0x1c0   :  { %285 = dma.done.wait [#allocation6], 32  }
 0x1c1   :  { %286 = vsyncadd [#allocation6], 4294967264 }
 0x1c2   :  { %183 = vsyncpa [#allocation5], 1 }
 0x1c3   :  { %184 = vsyncpa [#allocation8], 1 }
 0x1c4   :  { %185 = vsyncpa [#allocation6], 1 }

</bundles_post_ra>
